<compile_context>
chip_gen: v7x
topology: tpu7x:2x2x1
jax: 0.10.0
libtpu: 0.0.40
codegen_flags: <defaults>
</compile_context>

<pallas_src>
import jax
import jax.numpy as jnp
from jax.experimental import pallas as pl
from jax.experimental.pallas import tpu as pltpu

IN_FEATURES = 3
OUT_FEATURES = 1
PAD_M = 8  # fixed sublane-aligned batch bucket


def linear_kernel(x_ref, w_ref, b_ref, o_ref):
    # y = x @ W^T + b with K=3, N=1 (24 FLOPs): pure VPU broadcast-multiply
    # ((8,3) * (1,3) via sublane broadcast) followed by an XLU lane reduction.
    prod = x_ref[...] * w_ref[...]                                   # (8, 3)
    o_ref[...] = jnp.sum(prod, axis=-1, keepdims=True) + b_ref[0, 0]  # (8, 1)


_linear_call = pl.pallas_call(
    linear_kernel,
    out_shape=jax.ShapeDtypeStruct((PAD_M, OUT_FEATURES), jnp.float32),
    in_specs=[
        pl.BlockSpec(memory_space=pltpu.MemorySpace.VMEM),   # x bucket (8, 3)
        pl.BlockSpec(memory_space=pltpu.MemorySpace.VMEM),   # weight row (1, 3)
        pl.BlockSpec(memory_space=pltpu.MemorySpace.SMEM),   # bias scalar (1, 1)
    ],
    out_specs=pl.BlockSpec(memory_space=pltpu.MemorySpace.VMEM),
)


@jax.jit
def forward_bucket(x_bucket, w_row, b_scalar):
    """Fixed-signature hot path: (8, 3) f32 -> (8, 1) f32. Single trace, single HLO."""
    return _linear_call(x_bucket, w_row, b_scalar)


def prepare_params(weight, bias):
    """Prepare (static) model parameters once, outside the per-call path.

    weight: (1, 3) f32 (torch layout: out_features x in_features)
    bias:   (1,)   f32
    returns: (w_row (1, 3) f32, b_scalar (1, 1) f32)
    """
    w_row = jnp.asarray(weight, jnp.float32).reshape(OUT_FEATURES, IN_FEATURES)
    b_scalar = jnp.asarray(bias, jnp.float32).reshape(1, 1)
    return w_row, b_scalar


def simple_model_forward(x, w_row, b_scalar):
    """Equivalent of torch.nn.Linear(3, 1) forward.

    x: (3,) or (B, 3) float32 with B <= 8.  Inputs are bucketed into a fixed
    (8, 3) shape so the jitted pallas_call never retraces; passing a full
    (8, 3) batch hits the zero-copy path (no padding at all).
    """
    x = jnp.asarray(x, jnp.float32)
    squeeze_batch = x.ndim == 1
    x2d = x[None, :] if squeeze_batch else x
    batch = x2d.shape[0]
    assert batch <= PAD_M, "this tiny kernel handles batch <= 8; see TODO(synk) above"

    if batch == PAD_M:
        x_bucket = x2d                                   # zero-copy fast path
    else:
        x_bucket = (
            jnp.zeros((PAD_M, IN_FEATURES), jnp.float32).at[:batch].set(x2d)
        )

    out = forward_bucket(x_bucket, w_row, b_scalar)[:batch]   # (batch, 1)
    return out[0] if squeeze_batch else out


def init_params(key):
    """Deterministic init mimicking torch.nn.Linear default (uniform +-1/sqrt(fan_in))."""
    k_w, k_b = jax.random.split(key)
    bound = 1.0 / (IN_FEATURES ** 0.5)
    weight = jax.random.uniform(
        k_w, (OUT_FEATURES, IN_FEATURES), jnp.float32, minval=-bound, maxval=bound
    )
    bias = jax.random.uniform(
        k_b, (OUT_FEATURES,), jnp.float32, minval=-bound, maxval=bound
    )
    return weight, bias


if __name__ == "__main__":
    key = jax.random.PRNGKey(0)
    k_params, k_x = jax.random.split(key)
    weight, bias = init_params(k_params)
    w_row, b_scalar = prepare_params(weight, bias)

    # Matches SimpleModel.dummy_input(): a single 3-vector.
    x = jax.random.uniform(k_x, (IN_FEATURES,), jnp.float32)
    y = simple_model_forward(x, w_row, b_scalar)
    jax.block_until_ready(y)
    y_ref = x @ weight.T + bias
    assert y.shape == (OUT_FEATURES,)
    assert jnp.allclose(y, y_ref, atol=1e-5, rtol=1e-5)

    # Full (8, 3) bucket: zero-padding, zero-retrace fast path.
    xb = jax.random.uniform(jax.random.PRNGKey(1), (PAD_M, IN_FEATURES), jnp.float32)
    yb = simple_model_forward(xb, w_row, b_scalar)
    jax.block_until_ready(yb)
    assert yb.shape == (PAD_M, OUT_FEATURES)
    assert jnp.allclose(yb, xb @ weight.T + bias, atol=1e-5, rtol=1e-5)

    # Ragged small batch: reuses the same jit trace via the fixed bucket.
    xs = jax.random.uniform(jax.random.PRNGKey(2), (4, IN_FEATURES), jnp.float32)
    ys = simple_model_forward(xs, w_row, b_scalar)
    jax.block_until_ready(ys)
    assert ys.shape == (4, OUT_FEATURES)
    assert jnp.allclose(ys, xs @ weight.T + bias, atol=1e-5, rtol=1e-5)

    print("KERNEL_OK")
</pallas_src>

<mosaic_0001>
module attributes {stable_mosaic.version = 11 : i64} {
  func.func @linear_kernel(%arg0: memref<8x3xf32, #tpu.memory_space<vmem>>, %arg1: memref<1x3xf32, #tpu.memory_space<vmem>>, %arg2: memref<1x1xf32, #tpu.memory_space<smem>>, %arg3: memref<8x1xf32, #tpu.memory_space<vmem>>) attributes {dimension_semantics = [], scalar_prefetch = 0 : i64, scratch_operands = 0 : i64, tpu.core_type = #tpu.core_type<tc>} {
    %c0 = arith.constant 0 : index
    %c0_0 = arith.constant 0 : index
    %0 = vector.load %arg0[%c0, %c0_0] : memref<8x3xf32, #tpu.memory_space<vmem>>, vector<8x3xf32>
    %c0_1 = arith.constant 0 : index
    %c0_2 = arith.constant 0 : index
    %1 = vector.load %arg1[%c0_1, %c0_2] : memref<1x3xf32, #tpu.memory_space<vmem>>, vector<1x3xf32>
    %2 = vector.broadcast %1 : vector<1x3xf32> to vector<8x3xf32>
    %3 = arith.mulf %0, %2 : vector<8x3xf32>
    %cst = arith.constant dense<0.000000e+00> : vector<8xf32>
    %4 = vector.multi_reduction <add>, %3, %cst [1] : vector<8x3xf32> to vector<8xf32>
    %5 = vector.shape_cast %4 : vector<8xf32> to vector<8x1xf32>
    %c0_3 = arith.constant 0 : index
    %c0_4 = arith.constant 0 : index
    %6 = memref.load %arg2[%c0_3, %c0_4] : memref<1x1xf32, #tpu.memory_space<smem>>
    %7 = vector.broadcast %6 : f32 to vector<8x1xf32>
    %8 = arith.addf %5, %7 : vector<8x1xf32>
    %c0_5 = arith.constant 0 : index
    %c0_6 = arith.constant 0 : index
    %9 = vector.load %arg3[%c0_5, %c0_6] : memref<8x1xf32, #tpu.memory_space<vmem>>, vector<8x1xf32>
    tpu.vector_store %arg3[%c0_5, %c0_6], %8 {strides = array<i32>} : memref<8x1xf32, #tpu.memory_space<vmem>>, vector<8x1xf32>,
    return
  }
}

</mosaic_0001>

<bundles_post_ra>
// kernel: forward_bucket.1
= control target key start
LH: loop header
LB: loop body
LE: loop exit
PB: predicated region body
PF: predicated region fallthrough
CT: control target
= control target key end

     0   :  { %vm24_vm0 = vcmask 23552   ;;  %vm31_vm1 = vcmask 7168   ;;  %s70_s0 = inlined_call_operand.vmem [shape: f32[8,3], index: 0, kind: input, shape index: {}]   ;;  %s71_s1 = inlined_call_operand.vmem [shape: f32[1,3], index: 1, kind: input, shape index: {}]   ;;  %s72_s2 = inlined_call_operand.<no memory space> [shape: f32[1,1], index: 2, kind: input, shape index: {}]   ;;  %s73_s3 = inlined_call_operand.vmem [shape: f32[8,1], index: 3, kind: output, shape index: {}]  }
   0x1   :  { %v15_v0 = vld [vmem:[%s70_s0] sm:$0xff]  ;;  %v29_v4 = vstv %s72_s2 }
   0x2   :  { %v37_v1 = vld [vmem:[%s71_s1] ss:$0 sm:$0xff] }
   0x3   :  { %v23_v2 = vmul.f32 %v37_v1, %v15_v0 }
   0x5   :  { %v25_v3 = vsel %vm24_vm0, %v23_v2, 0.0 }
   0x6   :  { %26 = vadd.xlane.f32.xlu0 %v25_v3 }
  0x93   :  { %v27_v5 = vpop.xlane.xlu0 %26 }
  0x94   :  { %v30_v6 = vadd.f32 %v29_v4, %v27_v5 }
  0x96   :  { %32 = vst.msk [vmem:[%s73_s3] sm:$0xff] %vm31_vm1, %v30_v6 }

</bundles_post_ra>
